<compile_context>
chip_gen: v5e
topology: v5e:2x2
jax: 0.10.0
libtpu: 0.0.40
codegen_flags: <defaults>
</compile_context>

<pallas_src>
import functools

import jax
import jax.numpy as jnp
from jax.experimental import pallas as pl
from jax.experimental.pallas import tpu as pltpu


def _residual_block_kernel(x_ref, w1_ref, b1_ref, w2_ref, b2_ref, m_ref, o_ref,
                           *, H, W):
    # x_ref : (1, C, H*W)   one batch element, spatial flattened on lanes
    # w*_ref: (C, 9*C)      conv weight packed as [c_out, (di, dj, c_in)]
    # b*_ref: (C, 1)        bias (broadcast along lanes)
    # m_ref : (9, 1, H*W)   0/1 border-validity mask per 3x3 tap
    # o_ref : (1, C, H*W)
    C = x_ref.shape[1]
    HW = H * W

    x = x_ref[0]                                    # (C, HW), lane-dense
    masks = [m_ref[k] for k in range(9)]            # each (1, HW)

    # Static lane shift of each 3x3 tap in the flattened (H*W) layout.
    shifts = [(di - 1) * W + (dj - 1) for di in range(3) for dj in range(3)]

    def im2col_t(a):
        # Transposed im2col (9*C, HW) from XLU lane rotations of `a` (C, HW).
        # For in-image positions the rotation never wraps, so rolled[p] is
        # exactly a[p + s]; wrapped / out-of-image positions are zeroed by the
        # precomputed masks.  No padded intermediate, all operands lane-dense.
        pieces = []
        for k, s in enumerate(shifts):
            if s == 0:                              # center tap: identity, mask == 1
                pieces.append(a)
            else:
                rolled = pltpu.roll(a, shift=(-s) % HW, axis=1)
                pieces.append(rolled * masks[k])
        return jnp.concatenate(pieces, axis=0)      # (9*C, HW)

    # conv1 as a single MXU matmul, then bias + ReLU in f32 (lane-dense).
    h1 = jnp.dot(w1_ref[...], im2col_t(x), preferred_element_type=jnp.float32)
    h1 = jnp.maximum(h1 + b1_ref[...], 0.0)         # (C, HW)

    # conv2 as a single MXU matmul, then bias + residual add, lane-dense store.
    out = jnp.dot(w2_ref[...], im2col_t(h1), preferred_element_type=jnp.float32)
    o_ref[0] = (out + b2_ref[...] + x).astype(o_ref.dtype)


def residual_block(x, w1, b1, w2, b2):
    """Forward pass of ResidualBlock.

    x      : (N, C, H, W) float32  (PyTorch NCHW layout)
    w1, w2 : (C, C, 3, 3) float32  (PyTorch OIHW conv weights)
    b1, b2 : (C,)         float32
    """
    N, C, H, W = x.shape
    HW = H * W

    # Free reshape — no transpose, no jnp.pad, no extra HBM copies.
    x_flat = x.reshape(N, C, HW).astype(jnp.float32)

    def pack_w(w):
        # (C_out, C_in, 3, 3) -> (C_out, 9*C_in), columns ordered (di, dj, c_in)
        return jnp.transpose(w, (0, 2, 3, 1)).reshape(C, 9 * C).astype(jnp.float32)

    w1m, w2m = pack_w(w1), pack_w(w2)
    b1c = b1.reshape(C, 1).astype(jnp.float32)
    b2c = b2.reshape(C, 1).astype(jnp.float32)

    # Border-validity masks for the 9 taps (shared by both convs and all batch
    # elements); lane-dense (9, 1, HW) of 0.0 / 1.0.
    yy, xx = jnp.meshgrid(jnp.arange(H), jnp.arange(W), indexing="ij")
    mask_list = []
    for di in range(3):
        for dj in range(3):
            dy, dx = di - 1, dj - 1
            valid = ((yy + dy >= 0) & (yy + dy < H) &
                     (xx + dx >= 0) & (xx + dx < W))
            mask_list.append(valid.reshape(1, 1, HW))
    masks = jnp.concatenate(mask_list, axis=0).astype(jnp.float32)

    kernel = functools.partial(_residual_block_kernel, H=H, W=W)

    out_flat = pl.pallas_call(
        kernel,
        out_shape=jax.ShapeDtypeStruct((N, C, HW), jnp.float32),
        grid_spec=pltpu.PrefetchScalarGridSpec(
            num_scalar_prefetch=0,
            grid=(N,),
            in_specs=[
                pl.BlockSpec((1, C, HW), lambda n: (n, 0, 0)),
                pl.BlockSpec((C, 9 * C), lambda n: (0, 0)),
                pl.BlockSpec((C, 1), lambda n: (0, 0)),
                pl.BlockSpec((C, 9 * C), lambda n: (0, 0)),
                pl.BlockSpec((C, 1), lambda n: (0, 0)),
                pl.BlockSpec((9, 1, HW), lambda n: (0, 0, 0)),
            ],
            out_specs=pl.BlockSpec((1, C, HW), lambda n: (n, 0, 0)),
        ),
        compiler_params=pltpu.CompilerParams(
            dimension_semantics=("parallel",)),
    )(x_flat, w1m, b1c, w2m, b2c, masks)

    return out_flat.reshape(N, C, H, W)   # free reshape back to NCHW


def reference(x, w1, b1, w2, b2):
    dn = ("NCHW", "OIHW", "NCHW")
    h = jax.lax.conv_general_dilated(x, w1, (1, 1), "SAME", dimension_numbers=dn)
    h = jnp.maximum(h + b1[None, :, None, None], 0.0)
    o = jax.lax.conv_general_dilated(h, w2, (1, 1), "SAME", dimension_numbers=dn)
    return o + b2[None, :, None, None] + x


if __name__ == "__main__":
    key = jax.random.PRNGKey(0)
    k_x, k_w1, k_b1, k_w2, k_b2 = jax.random.split(key, 5)

    N, C, H, W = 2, 4, 16, 16
    x = jax.random.normal(k_x, (N, C, H, W), dtype=jnp.float32)
    # Deterministic synthetic params in PyTorch OIHW layout.
    w1 = 0.1 * jax.random.normal(k_w1, (C, C, 3, 3), dtype=jnp.float32)
    b1 = 0.1 * jax.random.normal(k_b1, (C,), dtype=jnp.float32)
    w2 = 0.1 * jax.random.normal(k_w2, (C, C, 3, 3), dtype=jnp.float32)
    b2 = 0.1 * jax.random.normal(k_b2, (C,), dtype=jnp.float32)

    out = jax.block_until_ready(residual_block(x, w1, b1, w2, b2))
    ref = jax.block_until_ready(reference(x, w1, b1, w2, b2))

    assert out.shape == (N, C, H, W)
    assert jnp.allclose(out, ref, atol=1e-4, rtol=1e-4), "mismatch vs reference conv"

    print("KERNEL_OK")
</pallas_src>

<mosaic_0001>
module attributes {stable_mosaic.version = 11 : i64} {
  func.func @_residual_block_kernel(%arg0: i32, %arg1: memref<1x4x256xf32, #tpu.memory_space<vmem>>, %arg2: memref<4x36xf32, #tpu.memory_space<vmem>>, %arg3: memref<4x1xf32, #tpu.memory_space<vmem>>, %arg4: memref<4x36xf32, #tpu.memory_space<vmem>>, %arg5: memref<4x1xf32, #tpu.memory_space<vmem>>, %arg6: memref<9x1x256xf32, #tpu.memory_space<vmem>>, %arg7: memref<1x4x256xf32, #tpu.memory_space<vmem>>) attributes {dimension_semantics = [#tpu.dimension_semantics<parallel>], iteration_bounds = array<i64: 2>, scalar_prefetch = 0 : i64, scratch_operands = 0 : i64, tpu.core_type = #tpu.core_type<tc>, window_params = [{transform_indices = @transform_0, window_bounds = array<i64: 1, 4, 256>}, {pipeline_mode = #tpu.pipeline_mode<synchronous>, transform_indices = @transform_1, window_bounds = array<i64: 4, 36>}, {pipeline_mode = #tpu.pipeline_mode<synchronous>, transform_indices = @transform_2, window_bounds = array<i64: 4, 1>}, {pipeline_mode = #tpu.pipeline_mode<synchronous>, transform_indices = @transform_3, window_bounds = array<i64: 4, 36>}, {pipeline_mode = #tpu.pipeline_mode<synchronous>, transform_indices = @transform_4, window_bounds = array<i64: 4, 1>}, {pipeline_mode = #tpu.pipeline_mode<synchronous>, transform_indices = @transform_5, window_bounds = array<i64: 9, 1, 256>}, {transform_indices = @transform_6, window_bounds = array<i64: 1, 4, 256>}]} {
    %c0 = arith.constant 0 : index
    %c0_0 = arith.constant 0 : index
    %c0_1 = arith.constant 0 : index
    %0 = vector.load %arg1[%c0, %c0_0, %c0_1] : memref<1x4x256xf32, #tpu.memory_space<vmem>>, vector<1x4x256xf32>
    %1 = vector.shape_cast %0 : vector<1x4x256xf32> to vector<4x256xf32>
    %c0_2 = arith.constant 0 : index
    %c0_3 = arith.constant 0 : index
    %c0_4 = arith.constant 0 : index
    %2 = vector.load %arg6[%c0_2, %c0_3, %c0_4] : memref<9x1x256xf32, #tpu.memory_space<vmem>>, vector<1x1x256xf32>
    %3 = vector.shape_cast %2 : vector<1x1x256xf32> to vector<1x256xf32>
    %c1 = arith.constant 1 : index
    %c0_5 = arith.constant 0 : index
    %c0_6 = arith.constant 0 : index
    %4 = vector.load %arg6[%c1, %c0_5, %c0_6] : memref<9x1x256xf32, #tpu.memory_space<vmem>>, vector<1x1x256xf32>
    %5 = vector.shape_cast %4 : vector<1x1x256xf32> to vector<1x256xf32>
    %c2 = arith.constant 2 : index
    %c0_7 = arith.constant 0 : index
    %c0_8 = arith.constant 0 : index
    %6 = vector.load %arg6[%c2, %c0_7, %c0_8] : memref<9x1x256xf32, #tpu.memory_space<vmem>>, vector<1x1x256xf32>
    %7 = vector.shape_cast %6 : vector<1x1x256xf32> to vector<1x256xf32>
    %c3 = arith.constant 3 : index
    %c0_9 = arith.constant 0 : index
    %c0_10 = arith.constant 0 : index
    %8 = vector.load %arg6[%c3, %c0_9, %c0_10] : memref<9x1x256xf32, #tpu.memory_space<vmem>>, vector<1x1x256xf32>
    %9 = vector.shape_cast %8 : vector<1x1x256xf32> to vector<1x256xf32>
    %c5 = arith.constant 5 : index
    %c0_11 = arith.constant 0 : index
    %c0_12 = arith.constant 0 : index
    %10 = vector.load %arg6[%c5, %c0_11, %c0_12] : memref<9x1x256xf32, #tpu.memory_space<vmem>>, vector<1x1x256xf32>
    %11 = vector.shape_cast %10 : vector<1x1x256xf32> to vector<1x256xf32>
    %c6 = arith.constant 6 : index
    %c0_13 = arith.constant 0 : index
    %c0_14 = arith.constant 0 : index
    %12 = vector.load %arg6[%c6, %c0_13, %c0_14] : memref<9x1x256xf32, #tpu.memory_space<vmem>>, vector<1x1x256xf32>
    %13 = vector.shape_cast %12 : vector<1x1x256xf32> to vector<1x256xf32>
    %c7 = arith.constant 7 : index
    %c0_15 = arith.constant 0 : index
    %c0_16 = arith.constant 0 : index
    %14 = vector.load %arg6[%c7, %c0_15, %c0_16] : memref<9x1x256xf32, #tpu.memory_space<vmem>>, vector<1x1x256xf32>
    %15 = vector.shape_cast %14 : vector<1x1x256xf32> to vector<1x256xf32>
    %c8 = arith.constant 8 : index
    %c0_17 = arith.constant 0 : index
    %c0_18 = arith.constant 0 : index
    %16 = vector.load %arg6[%c8, %c0_17, %c0_18] : memref<9x1x256xf32, #tpu.memory_space<vmem>>, vector<1x1x256xf32>
    %17 = vector.shape_cast %16 : vector<1x1x256xf32> to vector<1x256xf32>
    %c0_19 = arith.constant 0 : index
    %c0_20 = arith.constant 0 : index
    %18 = vector.load %arg2[%c0_19, %c0_20] : memref<4x36xf32, #tpu.memory_space<vmem>>, vector<4x36xf32>
    %c17_i32 = arith.constant 17 : i32
    %19 = tpu.dynamic_rotate %1 by %c17_i32 dim 1 : vector<4x256xf32>, i32 -> vector<4x256xf32>
    %20 = vector.broadcast %3 : vector<1x256xf32> to vector<4x256xf32>
    %21 = arith.mulf %19, %20 : vector<4x256xf32>
    %c16_i32 = arith.constant 16 : i32
    %22 = tpu.dynamic_rotate %1 by %c16_i32 dim 1 : vector<4x256xf32>, i32 -> vector<4x256xf32>
    %23 = vector.broadcast %5 : vector<1x256xf32> to vector<4x256xf32>
    %24 = arith.mulf %22, %23 : vector<4x256xf32>
    %c15_i32 = arith.constant 15 : i32
    %25 = tpu.dynamic_rotate %1 by %c15_i32 dim 1 : vector<4x256xf32>, i32 -> vector<4x256xf32>
    %26 = vector.broadcast %7 : vector<1x256xf32> to vector<4x256xf32>
    %27 = arith.mulf %25, %26 : vector<4x256xf32>
    %c1_i32 = arith.constant 1 : i32
    %28 = tpu.dynamic_rotate %1 by %c1_i32 dim 1 : vector<4x256xf32>, i32 -> vector<4x256xf32>
    %29 = vector.broadcast %9 : vector<1x256xf32> to vector<4x256xf32>
    %30 = arith.mulf %28, %29 : vector<4x256xf32>
    %c255_i32 = arith.constant 255 : i32
    %31 = tpu.dynamic_rotate %1 by %c255_i32 dim 1 : vector<4x256xf32>, i32 -> vector<4x256xf32>
    %32 = vector.broadcast %11 : vector<1x256xf32> to vector<4x256xf32>
    %33 = arith.mulf %31, %32 : vector<4x256xf32>
    %c241_i32 = arith.constant 241 : i32
    %34 = tpu.dynamic_rotate %1 by %c241_i32 dim 1 : vector<4x256xf32>, i32 -> vector<4x256xf32>
    %35 = vector.broadcast %13 : vector<1x256xf32> to vector<4x256xf32>
    %36 = arith.mulf %34, %35 : vector<4x256xf32>
    %c240_i32 = arith.constant 240 : i32
    %37 = tpu.dynamic_rotate %1 by %c240_i32 dim 1 : vector<4x256xf32>, i32 -> vector<4x256xf32>
    %38 = vector.broadcast %15 : vector<1x256xf32> to vector<4x256xf32>
    %39 = arith.mulf %37, %38 : vector<4x256xf32>
    %c239_i32 = arith.constant 239 : i32
    %40 = tpu.dynamic_rotate %1 by %c239_i32 dim 1 : vector<4x256xf32>, i32 -> vector<4x256xf32>
    %41 = vector.broadcast %17 : vector<1x256xf32> to vector<4x256xf32>
    %42 = arith.mulf %40, %41 : vector<4x256xf32>
    %43 = tpu.concatenate %21, %24, %27, %30, %1, %33, %36, %39, %42 in 0 : vector<4x256xf32>, vector<4x256xf32>, vector<4x256xf32>, vector<4x256xf32>, vector<4x256xf32>, vector<4x256xf32>, vector<4x256xf32>, vector<4x256xf32>, vector<4x256xf32> -> vector<36x256xf32>
    %cst = arith.constant dense<0.000000e+00> : vector<4x256xf32>
    %44 = tpu.matmul %18, %43, %cst {dimension_numbers = #tpu.dot_dimension_numbers<[1], [0], [0], [1], [0, 0, 1, 1], [], []>} : vector<4x36xf32>, vector<36x256xf32>, vector<4x256xf32> -> vector<4x256xf32>
    %c0_21 = arith.constant 0 : index
    %c0_22 = arith.constant 0 : index
    %45 = vector.load %arg3[%c0_21, %c0_22] : memref<4x1xf32, #tpu.memory_space<vmem>>, vector<4x1xf32>
    %46 = vector.broadcast %45 : vector<4x1xf32> to vector<4x256xf32>
    %47 = arith.addf %44, %46 : vector<4x256xf32>
    %cst_23 = arith.constant 0.000000e+00 : f32
    %48 = vector.broadcast %cst_23 : f32 to vector<4x256xf32>
    %49 = arith.maximumf %47, %48 : vector<4x256xf32>
    %c0_24 = arith.constant 0 : index
    %c0_25 = arith.constant 0 : index
    %50 = vector.load %arg4[%c0_24, %c0_25] : memref<4x36xf32, #tpu.memory_space<vmem>>, vector<4x36xf32>
    %c17_i32_26 = arith.constant 17 : i32
    %51 = tpu.dynamic_rotate %49 by %c17_i32_26 dim 1 : vector<4x256xf32>, i32 -> vector<4x256xf32>
    %52 = vector.broadcast %3 : vector<1x256xf32> to vector<4x256xf32>
    %53 = arith.mulf %51, %52 : vector<4x256xf32>
    %c16_i32_27 = arith.constant 16 : i32
    %54 = tpu.dynamic_rotate %49 by %c16_i32_27 dim 1 : vector<4x256xf32>, i32 -> vector<4x256xf32>
    %55 = vector.broadcast %5 : vector<1x256xf32> to vector<4x256xf32>
    %56 = arith.mulf %54, %55 : vector<4x256xf32>
    %c15_i32_28 = arith.constant 15 : i32
    %57 = tpu.dynamic_rotate %49 by %c15_i32_28 dim 1 : vector<4x256xf32>, i32 -> vector<4x256xf32>
    %58 = vector.broadcast %7 : vector<1x256xf32> to vector<4x256xf32>
    %59 = arith.mulf %57, %58 : vector<4x256xf32>
    %c1_i32_29 = arith.constant 1 : i32
    %60 = tpu.dynamic_rotate %49 by %c1_i32_29 dim 1 : vector<4x256xf32>, i32 -> vector<4x256xf32>
    %61 = vector.broadcast %9 : vector<1x256xf32> to vector<4x256xf32>
    %62 = arith.mulf %60, %61 : vector<4x256xf32>
    %c255_i32_30 = arith.constant 255 : i32
    %63 = tpu.dynamic_rotate %49 by %c255_i32_30 dim 1 : vector<4x256xf32>, i32 -> vector<4x256xf32>
    %64 = vector.broadcast %11 : vector<1x256xf32> to vector<4x256xf32>
    %65 = arith.mulf %63, %64 : vector<4x256xf32>
    %c241_i32_31 = arith.constant 241 : i32
    %66 = tpu.dynamic_rotate %49 by %c241_i32_31 dim 1 : vector<4x256xf32>, i32 -> vector<4x256xf32>
    %67 = vector.broadcast %13 : vector<1x256xf32> to vector<4x256xf32>
    %68 = arith.mulf %66, %67 : vector<4x256xf32>
    %c240_i32_32 = arith.constant 240 : i32
    %69 = tpu.dynamic_rotate %49 by %c240_i32_32 dim 1 : vector<4x256xf32>, i32 -> vector<4x256xf32>
    %70 = vector.broadcast %15 : vector<1x256xf32> to vector<4x256xf32>
    %71 = arith.mulf %69, %70 : vector<4x256xf32>
    %c239_i32_33 = arith.constant 239 : i32
    %72 = tpu.dynamic_rotate %49 by %c239_i32_33 dim 1 : vector<4x256xf32>, i32 -> vector<4x256xf32>
    %73 = vector.broadcast %17 : vector<1x256xf32> to vector<4x256xf32>
    %74 = arith.mulf %72, %73 : vector<4x256xf32>
    %75 = tpu.concatenate %53, %56, %59, %62, %49, %65, %68, %71, %74 in 0 : vector<4x256xf32>, vector<4x256xf32>, vector<4x256xf32>, vector<4x256xf32>, vector<4x256xf32>, vector<4x256xf32>, vector<4x256xf32>, vector<4x256xf32>, vector<4x256xf32> -> vector<36x256xf32>
    %cst_34 = arith.constant dense<0.000000e+00> : vector<4x256xf32>
    %76 = tpu.matmul %50, %75, %cst_34 {dimension_numbers = #tpu.dot_dimension_numbers<[1], [0], [0], [1], [0, 0, 1, 1], [], []>} : vector<4x36xf32>, vector<36x256xf32>, vector<4x256xf32> -> vector<4x256xf32>
    %c0_35 = arith.constant 0 : index
    %c0_36 = arith.constant 0 : index
    %77 = vector.load %arg5[%c0_35, %c0_36] : memref<4x1xf32, #tpu.memory_space<vmem>>, vector<4x1xf32>
    %78 = vector.broadcast %77 : vector<4x1xf32> to vector<4x256xf32>
    %79 = arith.addf %76, %78 : vector<4x256xf32>
    %80 = arith.addf %79, %1 : vector<4x256xf32>
    %c0_37 = arith.constant 0 : index
    %c0_38 = arith.constant 0 : index
    %c0_39 = arith.constant 0 : index
    %81 = vector.load %arg7[%c0_37, %c0_38, %c0_39] : memref<1x4x256xf32, #tpu.memory_space<vmem>>, vector<1x4x256xf32>
    %82 = vector.shape_cast %81 : vector<1x4x256xf32> to vector<4x256xf32>
    %83 = vector.shape_cast %80 : vector<4x256xf32> to vector<1x4x256xf32>
    tpu.vector_store %arg7[%c0_37, %c0_38, %c0_39], %83 {strides = array<i32>} : memref<1x4x256xf32, #tpu.memory_space<vmem>>, vector<1x4x256xf32>,
    return
  }
  func.func @transform_0(%arg0: i32) -> (i32, i32, i32) {
    %c0_i32 = arith.constant 0 : i32
    %c0_i32_0 = arith.constant 0 : i32
    %c0_i32_1 = arith.constant 0 : i32
    return %arg0, %c0_i32, %c0_i32_0 : i32, i32, i32
  }
  func.func @transform_1(%arg0: i32) -> (i32, i32) {
    %c0_i32 = arith.constant 0 : i32
    %c0_i32_0 = arith.constant 0 : i32
    %c0_i32_1 = arith.constant 0 : i32
    return %c0_i32, %c0_i32_0 : i32, i32
  }
  func.func @transform_2(%arg0: i32) -> (i32, i32) {
    %c0_i32 = arith.constant 0 : i32
    %c0_i32_0 = arith.constant 0 : i32
    %c0_i32_1 = arith.constant 0 : i32
    return %c0_i32, %c0_i32_0 : i32, i32
  }
  func.func @transform_3(%arg0: i32) -> (i32, i32) {
    %c0_i32 = arith.constant 0 : i32
    %c0_i32_0 = arith.constant 0 : i32
    %c0_i32_1 = arith.constant 0 : i32
    return %c0_i32, %c0_i32_0 : i32, i32
  }
  func.func @transform_4(%arg0: i32) -> (i32, i32) {
    %c0_i32 = arith.constant 0 : i32
    %c0_i32_0 = arith.constant 0 : i32
    %c0_i32_1 = arith.constant 0 : i32
    return %c0_i32, %c0_i32_0 : i32, i32
  }
  func.func @transform_5(%arg0: i32) -> (i32, i32, i32) {
    %c0_i32 = arith.constant 0 : i32
    %c0_i32_0 = arith.constant 0 : i32
    %c0_i32_1 = arith.constant 0 : i32
    %c0_i32_2 = arith.constant 0 : i32
    return %c0_i32, %c0_i32_0, %c0_i32_1 : i32, i32, i32
  }
  func.func @transform_6(%arg0: i32) -> (i32, i32, i32) {
    %c0_i32 = arith.constant 0 : i32
    %c0_i32_0 = arith.constant 0 : i32
    %c0_i32_1 = arith.constant 0 : i32
    return %arg0, %c0_i32, %c0_i32_0 : i32, i32, i32
  }
}

</mosaic_0001>

<bundles_post_ra>
// kernel: tpu_custom_call.1
= control target key start
LH: loop header
LB: loop body
LE: loop exit
PB: predicated region body
PF: predicated region fallthrough
CT: control target
= control target key end

     0   :  { %11 = vsyncpa [#allocation3], 0  ;;  %s1489_s0 = inlined_call_operand.hbm [shape: f32[2,4,256], index: 0, kind: input, shape index: {}]   ;;  %s1490_s1 = inlined_call_operand.vmem [shape: f32[4,36], index: 1, kind: input, shape index: {}]   ;;  %s1491_s2 = inlined_call_operand.vmem [shape: f32[4,1], index: 2, kind: input, shape index: {}]   ;;  %s1492_s3 = inlined_call_operand.vmem [shape: f32[4,36], index: 3, kind: input, shape index: {}]   ;;  %s1493_s4 = inlined_call_operand.vmem [shape: f32[4,1], index: 4, kind: input, shape index: {}]   ;;  %s1494_s5 = inlined_call_operand.hbm [shape: f32[9,1,256], index: 5, kind: input, shape index: {}]   ;;  %s1495_s6 = inlined_call_operand.hbm [shape: f32[2,4,256], index: 6, kind: output, shape index: {}]  }
   0x1   :  { %13 = vsyncpa [#allocation3 + $0x1], 0 }
   0x2   :  { %14 = vsyncpa [#allocation6], 0 }
   0x3   :  { %15 = vsyncpa [#allocation4], 0 }
   0x4   :  { %17 = vsyncpa [#allocation4 + $0x1], 0  ;;  %s1092_s21 = smov 0   ;;  %s1094_s22 = smov 0  }
   0x5   :  { %s1096_s23 = smov 0   ;;  %s1098_s24 = smov 0  }
   0x6 LB: > { %s208_s27 = sshll.u32 %s1494_s5, 4  ;;  %s1116_s28 = sadd.s32 4294967295, %s1043_s24   ;;  %s1043_s24 = sphi %s1098_s24, %s1505_s24   ;;  %s1039_s23 = sphi %s1096_s23, %s1504_s23   ;;  %s1035_s22 = sphi %s1094_s22, %s1503_s22   ;;  %s1031_s21 = sphi %s1092_s21, %s1502_s21   ;;  %s209_s27 = int_to_ptr.hbm [resolvable:$true] %s208_s27 }
   0x7   : > { %p818_p0 = scmp.ge.s32.totalorder %s1043_s24, 1  ;;  %p44_p1 = scmp.eq.s32.totalorder %s1116_s28, 0 }
   0x8   : > { %p185_p2 = scmp.lt.s32.totalorder %s1043_s24, 3  ;;  %s1045_s30 = smov [#allocation5]  }
   0x9   : > { %s210_s7 = sshll.u32 %s1045_s30, 4  ;;  %s1046_s8 = smov 32   ;;  %s211_s7 = int_to_ptr.vmem [resolvable:$true] %s210_s7 }
   0xa   : > { %p1121_p3 = pnand %p818_p0, %p185_p2  ;;  %s1047_s9 = smov 2  }
   0xb   : > { %s817_s10 = sadd.s32 4294967294, %s1043_s24   ;;  %s1132_s11 = sadd.s32 1, %s1043_s24  }
   0xc   : > { %p851_p4 = pneg %p1121_p3  ;;  %s30_s12 = sadd.s32 1, %s1039_s23 }
   0xd   : > { %s27_s13 = ssub.s32 %s1043_s24, %s1132_s11  ;;  %p37_p7 = scmp.ne.s32.totalorder %s1039_s23, %s1035_s22 }
   0xe   : > { %p852_p6 = pnand %p851_p4, %p44_p1  ;;  %p28_p8 = scmp.eq.s32.totalorder %s27_s13, 0 }
   0xf   : > { %p38_p9 = scmp.eq.s32.totalorder %s1043_s24, 0  ;;  %p43_p10 = scmp.ne.s32.totalorder %s1035_s22, %s1031_s21 }
  0x10   : > { %854 = dma.hbm_to_vmem [thread:$0]  (!%p852_p6), %s209_s27, 288, %s211_s7, [#allocation6], %s1046_s8, %s1046_s8, %s1047_s9  }
  0x11   : > { %p172_p11 = scmp.eq.s32.totalorder %s1116_s28, 1  ;;  %p1148_p12 = por %p44_p1, %p43_p10 }
  0x12   : > { %s1144_s14 = scalar_select %p28_p8, %s1039_s23, %s30_s12  }
  0x13   : > { %p1152_p13 = por %p172_p11, %p37_p7  ;;  %p178_p0 = scmp.eq.s32.totalorder %s817_s10, 1 }
  0x14   : > { %p39_p2 = por %p38_p9, %p37_p7  ;;  %s224_s17 = sand.u32 1, %s1039_s23  }
  0x15   : > { %p1157_p4 = por %p178_p0, %p43_p10  ;;  %p864_p6 = scmp.lt.s32.totalorder %s1043_s24, 2 }
  0x16   : > { %s821_s19 = sshll.u32 %s224_s17, 3  ;;  %s841_s20 = sshll.u32 %s1043_s24, 3 }
  0x17   : > { %s233_s27 = scalar_lea.hbm %s1489_s0, %s841_s20  ;;  %s228_s7 = scalar_lea.vmem [#allocation2], %s821_s19 }
  0x18   : > { %s235_s30 = sshll.u32 %s233_s27, 4  ;;  %s237_s8 = sshll.u32 %s228_s7, 4  ;;  %s236_s30 = int_to_ptr.hbm [resolvable:$true] %s235_s30  ;;  %s238_s8 = int_to_ptr.vmem [resolvable:$true] %s237_s8 }
  0x19   : > { %p1166_p8 = pnand %p864_p6, %p39_p2  ;;  %s225_s10 = scalar_lea.sflag [#allocation3], %s224_s17 }
  0x1a   : > { %s943_s12 = sshra.s32 %s236_s30, 4  ;;  %s950_s19 = scalar_lea.hbm %s1489_s0, 16  ;;  %s944_s12 = int_to_ptr.hbm [resolvable:$true] %s943_s12 }
  0x1b   : > { %s945_s13 = scalar_lea.hbm %s944_s12, 8  ;;  %p947_p9 = pneg %p1166_p8 }
  0x1c   : > { %p946_p7 = scmp.ne.s32.totalorder %s944_s12, %s945_s13  ;;  %p951_p0 = scmp.lt.s32.totalorder %s944_s12, %s1489_s0 }
  0x1d   : > { %p952_p2 = scmp.lt.s32.totalorder %s950_s19, %s945_s13 }
  0x1e   : > { %p948_p10 = pnand %p947_p9, %p946_p7 }
  0x1f   : > { %p953_p6 = por %p952_p2, %p951_p0 }
  0x20   : > { %p949_p11 = pneg %p948_p10 }
  0x22   : > { %p954_p5 = pnand %p953_p6, %p949_p11 }
  0x24   : > { %957 = shalt.err (!%p954_p5)
}
  0x25   : > { %858 = dma.hbm_to_vmem [thread:$0]  (!%p1166_p8), %s236_s30, 128, %s238_s8, %s225_s10  }
  0x26   : > { %246 = sbr.rel (%p1121_p3) target bundleno = 675 (0x2a3), region = 44  ;;  %s1183_s17 = sand.u32 (!%p1121_p3), 1, %s1035_s22  }
  0x27   : > { %s825_s7 = sshll.u32 (!%p1121_p3), %s1183_s17, 3  ;;  %s249_s20 = scalar_lea.sflag (!%p1121_p3), [#allocation3], %s1183_s17 }
  0x28   : > { %s252_s12 = scalar_lea.vmem (!%p1121_p3), [#allocation2], %s825_s7 }
  0x2b   : > { %1018 = dma.done.wait (%p1148_p12), %s249_s20, 128  }
  0x2c   : > { %1020 = vsyncadd (%p1148_p12), %s249_s20, 4294967168 }
  0x2d   : > { %1022 = dma.done.wait (%p44_p1), [#allocation6], 288  }
  0x2e   : > { %1024 = vsyncadd (%p44_p1), [#allocation6], 4294967008  ;;  %v287_v0 = vld [vmem:[%s252_s12] sm:$0xff]  ;;  %s1048_s29 = smov 16   ;;  %s1049_s15 = smov 15   ;;  %v314_v29 = vlaneseq  ;;  %v1056_v30 = vmov 0  }
  0x2f   : > { %305 = vst [vmem:[#allocation1] ss:$2 sm:$0xff] %v287_v0  ;;  %s1050_s30 = smov 1   ;;  %s1051_s8 = smov 127   ;;  %v497_v28 = vld [vmem:[%s1491_s2] sm:$0xf]  ;;  %911 = vset.pattern.permute.xlu1 %v1056_v30  ;;  %912 = vset.pattern.permute.xlu0 %v1056_v30 }
  0x30   : > { %s1052_s9 = smov 113   ;;  %s1053_s10 = smov 112   ;;  %v1226_v31 = vand.u32 127, %v314_v29  ;;  %v1228_v32 = vld [vmem:[#allocation5 + $0xe] sm:$0x3]  ;;  %vm488_vm6 = vcmask 1043456  }
  0x31   : > { %s1054_s13 = smov 17   ;;  %s1055_s25 = smov 111   ;;  %v1231_v33 = vld [vmem:[#allocation5 + $0x2] sm:$0x3]  ;;  %v1233_v34 = vld [vmem:[#allocation5 + $0xa] sm:$0x3] }
  0x32   : > { %vm430_vm0 = vcmp.lt.s32.totalorder %v1226_v31, 112  ;;  %v1235_v37 = vld [vmem:[#allocation5 + $0x6] sm:$0x3]  ;;  %vm392_vm1 = vcmp.lt.s32.totalorder %v1226_v31, 127  ;;  %v434_v38 = vperm.slane %v1228_v32, 0  ;;  %v435_v39 = vperm.slane %v1228_v32, 1 }
  0x33   : > { %v339_v43 = vperm.slane %v1231_v33, 0  ;;  %v396_v44 = vperm.slane %v1233_v34, 0  ;;  %v397_v45 = vperm.slane %v1233_v34, 1  ;;  %v1247_v46 = vld [vmem:[#allocation5 + $0x10] sm:$0x3]  ;;  %v340_v47 = vperm.slane %v1231_v33, 1 }
  0x34   : > { %v377_v48 = vperm.slane %v1235_v37, 0  ;;  %v1251_v49 = vld [vmem:[#allocation5 + $0xc] sm:$0x3]  ;;  %vm373_vm2 = vcmp.lt.s32.totalorder %v1226_v31, 1  ;;  %vm411_vm3 = vcmp.lt.s32.totalorder %v1226_v31, 113  ;;  %v378_v54 = vperm.slane %v1235_v37, 1 }
  0x35   : > { %vm449_vm4 = vcmp.lt.s32.totalorder %v1226_v31, 111  ;;  %v453_v55 = vperm.slane %v1247_v46, 0  ;;  %v454_v56 = vperm.slane %v1247_v46, 1  ;;  %v415_v57 = vperm.slane %v1251_v49, 0 }
  0x36   : > { %v306_v1 = vld.sshfl [vmem:[#allocation1] sm:$0xff pattern:$0x75316420]  ;;  %v307_v2 = vld.sshfl [vmem:[#allocation1 + $0x8] sm:$0xff pattern:$0x75316420] }
  0x37   : > { %326 = vst [vmem:[#allocation1] ss:$2 sm:$0xff] %v287_v0  ;;  %v416_v58 = vperm.slane %v1251_v49, 1  ;;  %vm335_vm5 = vcmp.lt.s32.totalorder %v1226_v31, 16  ;;  %vm316_vm7 = vcmp.lt.s32.totalorder %v1226_v31, 17  ;;  %vm354_vm8 = vcmp.lt.s32.totalorder %v1226_v31, 15 }
  0x38   : > { %vm503_vm9 = vcmask 293888  }
  0x3e   : > { %v327_v3 = vld.sshfl [vmem:[#allocation1] sm:$0xff pattern:$0x75316420]  ;;  %v328_v4 = vld.sshfl [vmem:[#allocation1 + $0x8] sm:$0xff pattern:$0x75316420] }
  0x3f   : > { %345 = vst [vmem:[#allocation1] ss:$2 sm:$0xff] %v287_v0  ;;  %331 = vrot.lane.b32.xlu1 %v327_v3, %s1048_s29  ;;  %333 = vrot.lane.b32.xlu2 %v328_v4, %s1048_s29 }
  0x46   : > { %v346_v5 = vld.sshfl [vmem:[#allocation1] sm:$0xff pattern:$0x75316420]  ;;  %v347_v6 = vld.sshfl [vmem:[#allocation1 + $0x8] sm:$0xff pattern:$0x75316420] }
  0x47   : > { %350 = vrot.lane.b32.xlu0 %v346_v5, %s1049_s15  ;;  %364 = vst [vmem:[#allocation1] ss:$2 sm:$0xff] %v287_v0 }
  0x4e   : > { %v365_v7 = vld.sshfl [vmem:[#allocation1] sm:$0xff pattern:$0x75316420]  ;;  %v366_v8 = vld.sshfl [vmem:[#allocation1 + $0x8] sm:$0xff pattern:$0x75316420] }
  0x4f   : > { %371 = vrot.lane.b32.xlu0 %v366_v8, %s1050_s30  ;;  %383 = vst [vmem:[#allocation1] ss:$2 sm:$0xff] %v287_v0  ;;  %369 = vrot.lane.b32.xlu2 %v365_v7, %s1050_s30 }
  0x56   : > { %v384_v9 = vld.sshfl [vmem:[#allocation1] sm:$0xff pattern:$0x75316420]  ;;  %v385_v10 = vld.sshfl [vmem:[#allocation1 + $0x8] sm:$0xff pattern:$0x75316420] }
  0x57   : > { %402 = vst [vmem:[#allocation1] ss:$2 sm:$0xff] %v287_v0  ;;  %388 = vrot.lane.b32.xlu2 %v384_v9, %s1051_s8 }
  0x5e   : > { %v403_v11 = vld.sshfl [vmem:[#allocation1] sm:$0xff pattern:$0x75316420]  ;;  %v404_v12 = vld.sshfl [vmem:[#allocation1 + $0x8] sm:$0xff pattern:$0x75316420] }
  0x5f   : > { %407 = vrot.lane.b32.xlu0 %v403_v11, %s1052_s9  ;;  %409 = vrot.lane.b32.xlu1 %v404_v12, %s1052_s9  ;;  %421 = vst [vmem:[#allocation1] ss:$2 sm:$0xff] %v287_v0 }
  0x60   : > { %390 = vrot.lane.b32.xlu2 %v385_v10, %s1051_s8 }
  0x66   : > { %v422_v13 = vld.sshfl [vmem:[#allocation1] sm:$0xff pattern:$0x75316420]  ;;  %v423_v14 = vld.sshfl [vmem:[#allocation1 + $0x8] sm:$0xff pattern:$0x75316420] }
  0x67   : > { %426 = vrot.lane.b32.xlu0 %v422_v13, %s1053_s10  ;;  %440 = vst [vmem:[#allocation1] ss:$2 sm:$0xff] %v287_v0  ;;  %v1296_v13 = vld [vmem:[#allocation5 + $0x4] sm:$0x3] }
  0x68   : > { %310 = vrot.lane.b32.xlu2 %v306_v1, %s1054_s13 }
  0x6e   : > { %v441_v15 = vld.sshfl [vmem:[#allocation1] sm:$0xff pattern:$0x75316420]  ;;  %v442_v16 = vld.sshfl [vmem:[#allocation1 + $0x8] sm:$0xff pattern:$0x75316420] }
  0x6f   : > { %428 = vrot.lane.b32.xlu0 %v423_v14, %s1053_s10  ;;  %445 = vrot.lane.b32.xlu1 %v441_v15, %s1055_s25  ;;  %471 = vst [vmem:[#allocation1] ss:$2 sm:$0xff] %v287_v0 }
  0x76   : > { %v1217_v20 = vld.sshfl [vmem:[#allocation1] sm:$0xff pattern:$0x75316420]  ;;  %v1219_v21 = vld.sshfl [vmem:[#allocation1 + $0x8] sm:$0xff pattern:$0x75316420] }
  0x77   : > { %312 = vrot.lane.b32.xlu0 %v307_v2, %s1054_s13  ;;  %447 = vrot.lane.b32.xlu1 %v442_v16, %s1055_s25  ;;  %707 = vst [vmem:[#allocation1] ss:$2 sm:$0xff] %v287_v0 }
  0x7f   : > { %352 = vrot.lane.b32.xlu1 %v347_v6, %s1049_s15  ;;  %v1286_v6 = vld [vmem:[#allocation5] sm:$0x3] }
  0x87   : > { %500 = vperm.xlu1 %911, %v497_v28   ;;  %v359_v28 = vperm.slane %v1296_v13, 1 }
  0x99   : > { %v1215_v18 = vpop.permute.xlu2 %333 }
  0xa9   : > { %v370_v23 = vpop.permute.xlu2 %369 }
  0xb1   : > { %v1221_v22 = vpop.permute.xlu1 %331  ;;  %v389_v26 = vpop.permute.xlu2 %388 }
  0xb2   : > { %v336_v14 = vsel %vm335_vm5, %v1221_v22, %v1215_v18  ;;  %v337_v15 = vsel %vm335_vm5, %v1215_v18, %v1221_v22  ;;  %v321_v22 = vperm.slane %v1286_v6, 1 }
  0xb9   : > { %v1213_v17 = vpop.permute.xlu0 %350 }
  0xba   : > { %v391_v40 = vpop.permute.xlu2 %390 }
  0xbb   : > { %v393_v50 = vsel %vm392_vm1, %v389_v26, %v391_v40  ;;  %v394_v51 = vsel %vm392_vm1, %v391_v40, %v389_v26  ;;  %v343_v40 = vmul.f32 %v339_v43, %v337_v15 }
  0xbc   : > { %v400_v59 = vmul.f32 %v396_v44, %v393_v50  ;;  %v401_v60 = vmul.f32 %v397_v45, %v394_v51 }
  0xbe   : > { %v478_v11 = vrot.slane %v400_v59, 4  ;;  %v479_v12 = vrot.slane %v401_v60, 4 }
  0xc1   : > { %v372_v19 = vpop.permute.xlu0 %371 }
  0xc2   : > { %v375_v61 = vsel %vm373_vm2, %v372_v19, %v370_v23  ;;  %v374_v5 = vsel %vm373_vm2, %v370_v23, %v372_v19  ;;  %v311_v19 = vpop.permute.xlu2 %310 }
  0xc3   : > { %v381_v16 = vmul.f32 %v377_v48, %v375_v61  ;;  %v461_v61 = vrot.slane %v343_v40, 4 }
  0xc5   : > { %v467_v50 = vrot.slane %v381_v16, 4 }
  0xd1   : > { %v408_v24 = vpop.permute.xlu0 %407  ;;  %v410_v25 = vpop.permute.xlu1 %409 }
  0xd2   : > { %v412_v62 = vsel %vm411_vm3, %v408_v24, %v410_v25  ;;  %v413_v63 = vsel %vm411_vm3, %v410_v25, %v408_v24  ;;  %v382_v24 = vmul.f32 %v378_v54, %v374_v5  ;;  %v320_v25 = vperm.slane %v1286_v6, 0 }
  0xd3   : > { %v419_v9 = vmul.f32 %v415_v57, %v412_v62  ;;  %v420_v10 = vmul.f32 %v416_v58, %v413_v63 }
  0xd4   : > { %v468_v51 = vrot.slane %v382_v24, 4 }
  0xd9   : > { %v427_v27 = vpop.permute.xlu0 %426 }
  0xe1   : > { %v429_v35 = vpop.permute.xlu0 %428  ;;  %v446_v36 = vpop.permute.xlu1 %445 }
  0xe2   : > { %v431_v41 = vsel %vm430_vm0, %v427_v27, %v429_v35  ;;  %v432_v42 = vsel %vm430_vm0, %v429_v35, %v427_v27  ;;  %v358_v27 = vperm.slane %v1296_v13, 0  ;;  %v493_v35 = vsel %vm488_vm6, %v1217_v20, %v478_v11  ;;  %v555_v13 = vld [vmem:[%s1492_s3] sm:$0xf] }
  0xe3   : > { %v438_v52 = vmul.f32 %v434_v38, %v431_v41  ;;  %v439_v53 = vmul.f32 %v435_v39, %v432_v42  ;;  %v344_v41 = vmul.f32 %v340_v47, %v336_v14 }
  0xe5   : > { %v484_v1 = vrot.slane %v438_v52, 4  ;;  %v485_v2 = vrot.slane %v439_v53, 4  ;;  %v462_v62 = vrot.slane %v344_v41, 4 }
  0xe7   : > { %v495_v26 = vsel %vm488_vm6, %v419_v9, %v484_v1  ;;  %v496_v18 = vsel %vm488_vm6, %v420_v10, %v485_v2 }
  0xe9   : > { %v448_v0 = vpop.permute.xlu1 %447  ;;  %v313_v23 = vpop.permute.xlu0 %312 }
  0xea   : > { %v450_v3 = vsel %vm449_vm4, %v446_v36, %v448_v0  ;;  %v451_v4 = vsel %vm449_vm4, %v448_v0, %v446_v36  ;;  %v317_v29 = vsel %vm316_vm7, %v311_v19, %v313_v23  ;;  %v318_v30 = vsel %vm316_vm7, %v313_v23, %v311_v19 }
  0xeb   : > { %v457_v7 = vmul.f32 %v453_v55, %v450_v3  ;;  %v458_v8 = vmul.f32 %v454_v56, %v451_v4  ;;  %v494_v36 = vsel %vm488_vm6, %v1219_v21, %v479_v12  ;;  %v324_v21 = vmul.f32 %v320_v25, %v318_v30  ;;  %v652_v30 = vld [vmem:[%s1493_s4] sm:$0xf] }
  0xec   : > { %v325_v53 = vmul.f32 %v321_v22, %v317_v29 }
  0xed   : > { %828 = vmatpush.msk.msra.mxu0 %vm488_vm6, %v457_v7  ;;  %830 = vmatpush.msk.msra.mxu1 %vm488_vm6, %v458_v8  ;;  %v489_v1 = vsel %vm488_vm6, %v324_v21, %v461_v61 }
  0xee   : > { %v490_v2 = vsel %vm488_vm6, %v325_v53, %v462_v62 }
  0xef   : > { %525 = vmatpush.msra.mxu0 %v495_v26  ;;  %545 = vmatpush.msra.mxu1 %v496_v18 }
  0xf1   : > { %v353_v42 = vpop.permute.xlu1 %352  ;;  %526 = vmatpush.msra.mxu0 %v493_v35  ;;  %546 = vmatpush.msra.mxu1 %v494_v36 }
  0xf2   : > { %v355_v52 = vsel %vm354_vm8, %v1213_v17, %v353_v42  ;;  %v356_v20 = vsel %vm354_vm8, %v353_v42, %v1213_v17  ;;  %v303_v17 = vld [vmem:[%s1490_s1] sm:$0xf] }
  0xf3   : > { %v362_v59 = vmul.f32 %v358_v27, %v356_v20  ;;  %v363_v60 = vmul.f32 %v359_v28, %v355_v52 }
  0xf5   : > { %v491_v63 = vsel %vm488_vm6, %v362_v59, %v467_v50  ;;  %v492_v0 = vsel %vm488_vm6, %v363_v60, %v468_v51 }
  0xf6   : > { %527 = vmatpush.msra.mxu0 %v491_v63  ;;  %547 = vmatpush.msra.mxu1 %v492_v0 }
  0xf8   : > { %528 = vmatpush.msra.mxu0 %v489_v1  ;;  %548 = vmatpush.msra.mxu1 %v490_v2 }
  0xf9   : > { %829 = vmatmul.msk.f32.vlgmr.msra.gmra.mxu0 %vm503_vm9, %v303_v17  ;;  %831 = vmatmul.msk.f32.vlgmr.msra.gmra.mxu1 %vm503_vm9, %v303_v17  ;;  %v501_v3 = vpop.permute.xlu1 %500 }
 0x176   : > { %v530_v4 = vpop.f32.mrf.mxu0  ;;  %v550_v5 = vpop.f32.mrf.mxu1 }
 0x177   : > { %v531_v7 = vadd.f32 %v530_v4, %v501_v3  ;;  %v551_v8 = vadd.f32 %v550_v5, %v501_v3 }
 0x179   : > { %v553_v9 = vmax.f32 %v531_v7, 0.0  ;;  %v554_v10 = vmax.f32 %v551_v8, 0.0 }
 0x17b   : > { %606 = vrot.lane.b32.xlu0 %v554_v10, %s1053_s10  ;;  %612 = vrot.lane.b32.xlu1 %v553_v9, %s1055_s25 }
 0x17c   : > { %604 = vrot.lane.b32.xlu2 %v553_v9, %s1053_s10 }
 0x183   : > { %588 = vrot.lane.b32.xlu0 %v553_v9, %s1051_s8  ;;  %590 = vrot.lane.b32.xlu1 %v554_v10, %s1051_s8  ;;  %s842_s8 = sshll.u32 %s1116_s28, 3  ;;  %s721_s28 = scalar_lea.sflag [#allocation4], %s1183_s17 }
 0x184   : > { %614 = vrot.lane.b32.xlu2 %v554_v10, %s1055_s25  ;;  %s286_s25 = scalar_lea.vmem [#allocation7], %s825_s7  ;;  %s993_s7 = scalar_lea.hbm %s1495_s6, 16 }
 0x185   : > { %s734_s19 = sshll.u32 %s286_s25, 4  ;;  %s735_s19 = int_to_ptr.vmem [resolvable:$true] %s734_s19 }
 0x18b   : > { %598 = vrot.lane.b32.xlu0 %v554_v10, %s1052_s9  ;;  %580 = vrot.lane.b32.xlu1 %v553_v9, %s1050_s30 }
 0x18c   : > { %596 = vrot.lane.b32.xlu2 %v553_v9, %s1052_s9 }
 0x193   : > { %564 = vrot.lane.b32.xlu0 %v553_v9, %s1048_s29  ;;  %566 = vrot.lane.b32.xlu1 %v554_v10, %s1048_s29 }
 0x194   : > { %582 = vrot.lane.b32.xlu2 %v554_v10, %s1050_s30 }
 0x19b   : > { %574 = vrot.lane.b32.xlu0 %v554_v10, %s1049_s15  ;;  %556 = vrot.lane.b32.xlu1 %v553_v9, %s1054_s13 }
 0x19c   : > { %572 = vrot.lane.b32.xlu2 %v553_v9, %s1049_s15 }
 0x1a3   : > { %655 = vperm.xlu0 %912, %v652_v30  }
 0x1a4   : > { %558 = vrot.lane.b32.xlu2 %v554_v10, %s1054_s13  ;;  %s732_s13 = scalar_lea.hbm %s1495_s6, %s842_s8 }
 0x1a5   : > { %s736_s26 = sshll.u32 %s732_s13, 4  ;;  %s737_s26 = int_to_ptr.hbm [resolvable:$true] %s736_s26 }
 0x1a6   : > { %s987_s27 = sshra.s32 %s737_s26, 4  ;;  %s988_s27 = int_to_ptr.hbm [resolvable:$true] %s987_s27 }
 0x1a7   : > { %s989_s20 = scalar_lea.hbm %s988_s27, 8  ;;  %p994_p12 = scmp.lt.s32.totalorder %s988_s27, %s1495_s6 }
 0x1a8   : > { %p990_p1 = scmp.ne.s32.totalorder %s988_s27, %s989_s20  ;;  %p995_p8 = scmp.lt.s32.totalorder %s993_s7, %s989_s20 }
 0x1aa   : > { %p991_p3 = pnand %p990_p1, %p1152_p13  ;;  %p996_p7 = por %p995_p8, %p994_p12 }
 0x1ac   : > { %p992_p5 = pneg %p991_p3 }
 0x1ae   : > { %p997_p9 = pnand %p996_p7, %p992_p5 }
 0x1d6   : > { %v605_v11 = vpop.permute.xlu2 %604 }
 0x1de   : > { %v615_v12 = vpop.permute.xlu2 %614 }
 0x1e6   : > { %v597_v16 = vpop.permute.xlu2 %596 }
 0x1ed   : > { %v607_v14 = vpop.permute.xlu0 %606  ;;  %v613_v15 = vpop.permute.xlu1 %612 }
 0x1ee   : > { %v616_v19 = vsel %vm449_vm4, %v613_v15, %v615_v12  ;;  %v617_v23 = vsel %vm449_vm4, %v615_v12, %v613_v15  ;;  %v608_v35 = vsel %vm430_vm0, %v605_v11, %v607_v14  ;;  %v583_v36 = vpop.permute.xlu2 %582 }
 0x1ef   : > { %v618_v24 = vmul.f32 %v616_v19, %v453_v55  ;;  %v619_v26 = vmul.f32 %v617_v23, %v454_v56  ;;  %v609_v55 = vsel %vm430_vm0, %v607_v14, %v605_v11  ;;  %v610_v40 = vmul.f32 %v608_v35, %v434_v38  ;;  %v709_v19 = vld.sshfl [vmem:[#allocation1 + $0x8] sm:$0xff pattern:$0x75316420] }
 0x1f0   : > { %v611_v41 = vmul.f32 %v609_v55, %v435_v39 }
 0x1f1   : > { %832 = vmatpush.msk.msra.mxu2 %vm488_vm6, %v618_v24  ;;  %834 = vmatpush.msk.msra.mxu3 %vm488_vm6, %v619_v26  ;;  %v640_v20 = vrot.slane %v610_v40, 4  ;;  %v708_v26 = vld.sshfl [vmem:[#allocation1] sm:$0xff pattern:$0x75316420] }
 0x1f2   : > { %v641_v21 = vrot.slane %v611_v41, 4 }
 0x1f5   : > { %v589_v18 = vpop.permute.xlu0 %588  ;;  %v591_v29 = vpop.permute.xlu1 %590 }
 0x1f6   : > { %v592_v46 = vsel %vm392_vm1, %v589_v18, %v591_v29  ;;  %v593_v56 = vsel %vm392_vm1, %v591_v29, %v589_v18 }
 0x1f7   : > { %v594_v42 = vmul.f32 %v592_v46, %v396_v44  ;;  %v595_v50 = vmul.f32 %v593_v56, %v397_v45  ;;  %v573_v45 = vpop.permute.xlu2 %572 }
 0x1f9   : > { %v634_v38 = vrot.slane %v594_v42, 4  ;;  %v635_v60 = vrot.slane %v595_v50, 4 }
 0x1fb   : > { %v648_v61 = vsel %vm488_vm6, %v553_v9, %v634_v38  ;;  %v649_v62 = vsel %vm488_vm6, %v554_v10, %v635_v60 }
 0x1fd   : > { %v599_v51 = vpop.permute.xlu0 %598  ;;  %v581_v52 = vpop.permute.xlu1 %580 }
 0x1fe   : > { %v600_v53 = vsel %vm411_vm3, %v597_v16, %v599_v51  ;;  %v601_v59 = vsel %vm411_vm3, %v599_v51, %v597_v16  ;;  %v585_v49 = vsel %vm373_vm2, %v583_v36, %v581_v52 }
 0x1ff   : > { %v602_v32 = vmul.f32 %v600_v53, %v415_v57  ;;  %v603_v39 = vmul.f32 %v601_v59, %v416_v58  ;;  %v584_v57 = vsel %vm373_vm2, %v581_v52, %v583_v36  ;;  %v586_v58 = vmul.f32 %v585_v49, %v377_v48  ;;  %v559_v3 = vpop.permute.xlu2 %558 }
 0x200   : > { %v587_v17 = vmul.f32 %v584_v57, %v378_v54 }
 0x201   : > { %v650_v34 = vsel %vm488_vm6, %v602_v32, %v640_v20  ;;  %v651_v44 = vsel %vm488_vm6, %v603_v39, %v641_v21  ;;  %v628_v4 = vrot.slane %v586_v58, 4 }
 0x202   : > { %679 = vmatpush.msra.mxu2 %v650_v34  ;;  %699 = vmatpush.msra.mxu3 %v651_v44  ;;  %v629_v5 = vrot.slane %v587_v17, 4 }
 0x204   : > { %680 = vmatpush.msra.mxu2 %v648_v61  ;;  %700 = vmatpush.msra.mxu3 %v649_v62 }
 0x205   : > { %v565_v63 = vpop.permute.xlu0 %564  ;;  %v567_v0 = vpop.permute.xlu1 %566 }
 0x206   : > { %v568_v1 = vsel %vm335_vm5, %v565_v63, %v567_v0  ;;  %v569_v2 = vsel %vm335_vm5, %v567_v0, %v565_v63 }
 0x207   : > { %v570_v7 = vmul.f32 %v569_v2, %v339_v43  ;;  %v571_v8 = vmul.f32 %v568_v1, %v340_v47 }
 0x209   : > { %v622_v14 = vrot.slane %v570_v7, 4  ;;  %v623_v15 = vrot.slane %v571_v8, 4 }
 0x20d   : > { %v575_v9 = vpop.permute.xlu0 %574  ;;  %v557_v48 = vpop.permute.xlu1 %556 }
 0x20e   : > { %v576_v37 = vsel %vm354_vm8, %v573_v45, %v575_v9  ;;  %v577_v54 = vsel %vm354_vm8, %v575_v9, %v573_v45  ;;  %v560_v10 = vsel %vm316_vm7, %v557_v48, %v559_v3  ;;  %v561_v11 = vsel %vm316_vm7, %v559_v3, %v557_v48 }
 0x20f   : > { %v578_v43 = vmul.f32 %v577_v54, %v358_v27  ;;  %v579_v33 = vmul.f32 %v576_v37, %v359_v28  ;;  %v562_v47 = vmul.f32 %v561_v11, %v320_v25  ;;  %v563_v12 = vmul.f32 %v560_v10, %v321_v22 }
 0x211   : > { %v646_v16 = vsel %vm488_vm6, %v578_v43, %v628_v4  ;;  %v647_v31 = vsel %vm488_vm6, %v579_v33, %v629_v5  ;;  %v644_v27 = vsel %vm488_vm6, %v562_v47, %v622_v14  ;;  %v645_v25 = vsel %vm488_vm6, %v563_v12, %v623_v15 }
 0x212   : > { %681 = vmatpush.msra.mxu2 %v646_v16  ;;  %701 = vmatpush.msra.mxu3 %v647_v31 }
 0x214   : > { %682 = vmatpush.msra.mxu2 %v644_v27  ;;  %702 = vmatpush.msra.mxu3 %v645_v25 }
 0x215   : > { %833 = vmatmul.msk.f32.vlgmr.msra.gmra.mxu2 %vm503_vm9, %v555_v13  ;;  %835 = vmatmul.msk.f32.vlgmr.msra.gmra.mxu3 %vm503_vm9, %v555_v13  ;;  %v656_v6 = vpop.permute.xlu0 %655 }
 0x298   : > { %v684_v22 = vpop.f32.mrf.mxu2  ;;  %v704_v28 = vpop.f32.mrf.mxu3 }
 0x299   : > { %v685_v23 = vadd.f32 %v684_v22, %v656_v6  ;;  %v705_v24 = vadd.f32 %v704_v28, %v656_v6 }
 0x29b   : > { %v713_v18 = vadd.f32 %v709_v19, %v705_v24  ;;  %v712_v29 = vadd.f32 %v708_v26, %v685_v23 }
 0x29d   : > { %v716_v30 = vrot.slane %v713_v18, 4 }
 0x29f   : > { %v717_v35 = vsel %vm488_vm6, %v712_v29, %v716_v30 }
 0x2a0   : > { %719 = vst [vmem:[%s286_s25] sm:$0xff] %v717_v35 }
 0x2a1   : > { %1000 = shalt.err (!%p997_p9)
}
 0x2a2   : > { %849 = dma.vmem_to_hbm [thread:$0]  (%p1152_p13), %s735_s19, 128, %s737_s26, %s721_s28  }
 0x2a3 PF: > { %s748_s17 = sand.u32 1, %s1031_s21   ;;  %p1501_p10 = scmp.ge.s32.totalorder %s1043_s24, 2 }
 0x2a4   : > { %s749_s8 = scalar_lea.sflag [#allocation4], %s748_s17 }
 0x2a5   : > { %p860_p11 = pnand %p1501_p10, %p1157_p4 }
 0x2a7   : > { %p861_p0 = pneg %p860_p11 }
 0x2a9   : > { %1026 = dma.done.wait (%p861_p0), %s749_s8, 128  }
 0x2aa   : > { %1028 = vsyncadd (%p861_p0), %s749_s8, 4294967168  ;;  %p20_p2 = scmp.ge.s32.totalorder %s1132_s11, 4   ;;  %s1502_s21 = smov %s1035_s22 }
 0x2ab   : > { %s1503_s22 = smov %s1039_s23  ;;  %s1504_s23 = smov %s1144_s14 }
 0x2ac   : > { %s1505_s24 = smov %s1132_s11  ;;  %22 = sbr.rel (!%p20_p2) target bundleno = 6 (0x6), region = 100 }
 0x2b1   :  { %755 = vsyncpa [#allocation3], 1 }
 0x2b2   :  { %757 = vsyncpa [#allocation3 + $0x1], 1 }
 0x2b3   :  { %758 = vsyncpa [#allocation6], 1 }
 0x2b4   :  { %759 = vsyncpa [#allocation4], 1 }
 0x2b5   :  { %761 = vsyncpa [#allocation4 + $0x1], 1 }

</bundles_post_ra>
